<compile_context>
chip_gen: v6e
topology: v6e:2x2x1
jax: 0.10.0
libtpu: 0.0.40
codegen_flags: <defaults>
</compile_context>

<pallas_src>
import functools

import jax
import jax.numpy as jnp
import numpy as np
from jax import lax
from jax.experimental import pallas as pl
from jax.experimental.pallas import tpu as pltpu


# ------------------------------ helpers -------------------------------------

def _round_up(x, m):
    return ((x + m - 1) // m) * m


def _choose_cout_tile(cout, n_batch, target=256):
    """Largest divisor of cout that is a multiple of 8 and <= target.
    When N == 1, prefer >= 2 Cout tiles so both v7x TensorCores get work."""
    cap = min(cout, target)
    if n_batch == 1 and cout >= 16:
        cap = min(cap, cout // 2)
    for t in range(cap, 7, -1):
        if cout % t == 0 and t % 8 == 0:
            return t
    return cout


def _vmem_limit_bytes():
    """Per-generation VMEM budget (85% of physical capacity)."""
    try:
        cap = int(pltpu.get_tpu_info().vmem_capacity_bytes)
    except Exception:
        cap = 64 * 1024 * 1024   # conservative fallback (v7x per-core VMEM)
    return int(0.85 * cap)


# ------------------------------- kernel -------------------------------------

def _downsample_kernel(ph_ref, w_ref, b_ref, mask_ref, o_ref, *,
                       taps, hwp_pad, inv_count, eps, neg_slope, apply_norm):
    """One grid step = full spatial extent of one (sample, Cout-tile).

    ph_ref   : (1, n_phases, Cin, Lf)  stride-phase split, flattened, padded
    w_ref    : (n_taps, TCout, Cin)    per-tap weight matrices
    b_ref    : (TCout, 1)              conv bias (f32)
    mask_ref : (1, hwp_pad)            1.0 on valid spatial lanes, else 0.0
    o_ref    : (1, TCout, hwp_pad)     wide-layout activations
    """
    acc = None
    for k, (p_idx, shift) in enumerate(taps):
        xs = ph_ref[0, p_idx, :, pl.ds(shift, hwp_pad)]          # (Cin, hwp_pad)
        d = jnp.dot(w_ref[k], xs, preferred_element_type=jnp.float32)
        acc = d if acc is None else acc + d                      # f32 accumulate
    acc = acc + b_ref[...]                                       # (TCout,1) bcast

    if apply_norm:
        m = mask_ref[...]                                        # (1, hwp_pad)
        mean = jnp.sum(acc * m, axis=-1, keepdims=True) * inv_count
        cen = acc - mean
        var = jnp.sum((cen * cen) * m, axis=-1, keepdims=True) * inv_count
        acc = cen * lax.rsqrt(var + eps)

    o_ref[0] = jnp.where(acc >= 0, acc, neg_slope * acc).astype(o_ref.dtype)


# ------------------------------- wrapper ------------------------------------

def downsample_forward(x, weight, bias, *, stride=2, padding=1,
                       apply_instancenorm=True, eps=1e-5,
                       conv_dtype=None, cout_tile_target=256,
                       negative_slope=0.2):
    """x: (N, Cin, H, W) NCHW.  weight: (Cout, Cin, kh, kw).  bias: (Cout,)."""
    N, Cin, H, W = x.shape
    Cout, Cin_w, kh, kw = weight.shape
    assert Cin_w == Cin
    sh = sw = stride
    Ho = (H + 2 * padding - kh) // sh + 1
    Wo = (W + 2 * padding - kw) // sw + 1

    da_max = (kh - 1) // sh
    db_max = (kw - 1) // sw
    Hph = Ho + da_max                    # rows per stride-phase
    Wph = Wo + db_max                    # cols per stride-phase ("wide" stride)
    n_phases = sh * sw
    n_taps = kh * kw

    HWp = Ho * Wph                       # wide flat spatial extent (real rows)
    hwp_pad = _round_up(max(HWp, 128), 128)
    s_max = da_max * Wph + db_max        # largest constant tap shift
    Lf = _round_up(hwp_pad + s_max + 1, 128)

    # ---- glue (plain JAX, ~1x input bytes): pad, phase-split, flatten -------
    xp = jnp.pad(x, ((0, 0), (0, 0), (padding, padding), (padding, padding)))
    Hp_need, Wp_need = sh * Hph, sw * Wph
    pad_h = max(0, Hp_need - xp.shape[2])
    pad_w = max(0, Wp_need - xp.shape[3])
    if pad_h or pad_w:
        xp = jnp.pad(xp, ((0, 0), (0, 0), (0, pad_h), (0, pad_w)))
    xp = xp[:, :, :Hp_need, :Wp_need]
    phases = xp.reshape(N, Cin, Hph, sh, Wph, sw)
    phases = phases.transpose(0, 3, 5, 1, 2, 4)          # (N, sh, sw, Cin, Hph, Wph)
    phases = phases.reshape(N, n_phases, Cin, Hph * Wph)
    phases = jnp.pad(phases, ((0, 0), (0, 0), (0, 0), (0, Lf - Hph * Wph)))

    w_taps = weight.transpose(2, 3, 0, 1).reshape(n_taps, Cout, Cin)
    if conv_dtype is not None:           # narrow the dominant HBM read here
        phases = phases.astype(conv_dtype)
        w_taps = w_taps.astype(conv_dtype)
    b2d = bias.reshape(Cout, 1).astype(jnp.float32)

    q = jnp.arange(hwp_pad, dtype=jnp.int32)
    mask = ((q % Wph) < Wo) & (q < HWp)
    mask = mask.astype(jnp.float32).reshape(1, hwp_pad)

    # static tap -> (phase index, constant flat shift) table
    taps = []
    for ki in range(kh):
        for kj in range(kw):
            a, da = ki % sh, ki // sh
            b, db = kj % sw, kj // sw
            taps.append((a * sw + b, da * Wph + db))
    taps = tuple(taps)

    TCout = _choose_cout_tile(Cout, N, cout_tile_target)
    n_ct = Cout // TCout
    grid = (N, n_ct)

    kernel = functools.partial(
        _downsample_kernel, taps=taps, hwp_pad=hwp_pad,
        inv_count=1.0 / float(Ho * Wo), eps=float(eps),
        neg_slope=float(negative_slope), apply_norm=bool(apply_instancenorm))

    itemsize = jnp.dtype(x.dtype).itemsize
    bytes_accessed = (phases.size * phases.dtype.itemsize
                      + w_taps.size * w_taps.dtype.itemsize
                      + b2d.size * 4 + mask.size * 4
                      + N * Cout * hwp_pad * itemsize)

    out_wide = pl.pallas_call(
        kernel,
        out_shape=jax.ShapeDtypeStruct((N, Cout, hwp_pad), x.dtype),
        grid_spec=pltpu.PrefetchScalarGridSpec(
            num_scalar_prefetch=0, grid=grid,
            in_specs=[
                # full per-sample phase block: VMEM-resident across Cout tiles
                pl.BlockSpec((1, n_phases, Cin, Lf), lambda n, c: (n, 0, 0, 0)),
                pl.BlockSpec((n_taps, TCout, Cin), lambda n, c: (0, c, 0)),
                pl.BlockSpec((TCout, 1), lambda n, c: (c, 0)),
                pl.BlockSpec((1, hwp_pad), lambda n, c: (0, 0)),
            ],
            out_specs=pl.BlockSpec((1, TCout, hwp_pad), lambda n, c: (n, c, 0)),
        ),
        compiler_params=pltpu.CompilerParams(
            dimension_semantics=("parallel", "parallel"),
            vmem_limit_bytes=_vmem_limit_bytes()),
        cost_estimate=pl.CostEstimate(
            flops=int(2.0 * N * Cout * Cin * n_taps * Ho * Wo),
            transcendentals=int(N * Cout) if apply_instancenorm else 0,
            bytes_accessed=int(bytes_accessed)),
    )(phases, w_taps, b2d, mask)

    # drop the padded tail + the garbage column of each wide row (cheap slice)
    y = out_wide[:, :, :HWp].reshape(N, Cout, Ho, Wph)[:, :, :, :Wo]
    return y


# ------------------------------ reference -----------------------------------

def _reference_forward(x, weight, bias, *, stride=2, padding=1,
                       apply_instancenorm=True, eps=1e-5):
    """Pure-JAX reference matching the PyTorch module."""
    y = lax.conv_general_dilated(
        x, weight, window_strides=(stride, stride),
        padding=((padding, padding), (padding, padding)),
        dimension_numbers=("NCHW", "OIHW", "NCHW"))
    y = y + bias.reshape(1, -1, 1, 1)
    if apply_instancenorm:
        mean = jnp.mean(y, axis=(2, 3), keepdims=True)
        var = jnp.mean((y - mean) ** 2, axis=(2, 3), keepdims=True)
        y = (y - mean) * lax.rsqrt(var + eps)
    return jnp.where(y >= 0, y, 0.2 * y)


if __name__ == "__main__":
    key = jax.random.PRNGKey(0)
    kx, kw_key, kb_key = jax.random.split(key, 3)

    N, Cin, Cout, H, W = 2, 4, 8, 16, 16
    ksz = 4

    x = jax.random.normal(kx, (N, Cin, H, W), dtype=jnp.float32)
    fan_in = Cin * ksz * ksz
    bound = 1.0 / float(np.sqrt(fan_in))
    weight = jax.random.uniform(kw_key, (Cout, Cin, ksz, ksz),
                                minval=-bound, maxval=bound, dtype=jnp.float32)
    bias = jax.random.uniform(kb_key, (Cout,), minval=-bound, maxval=bound,
                              dtype=jnp.float32)

    # with instance norm (single fused pass)
    out = jax.block_until_ready(
        downsample_forward(x, weight, bias, apply_instancenorm=True))
    ref = jax.block_until_ready(
        _reference_forward(x, weight, bias, apply_instancenorm=True))
    assert out.shape == (N, Cout, H // 2, W // 2)
    np.testing.assert_allclose(np.asarray(out), np.asarray(ref),
                               rtol=1e-4, atol=1e-4)

    # without instance norm (same fused kernel, norm skipped)
    out2 = jax.block_until_ready(
        downsample_forward(x, weight, bias, apply_instancenorm=False))
    ref2 = jax.block_until_ready(
        _reference_forward(x, weight, bias, apply_instancenorm=False))
    np.testing.assert_allclose(np.asarray(out2), np.asarray(ref2),
                               rtol=1e-4, atol=1e-4)

    print("KERNEL_OK")
</pallas_src>

<mosaic_0001>
module attributes {stable_mosaic.version = 11 : i64} {
  func.func @_downsample_kernel(%arg0: i32, %arg1: i32, %arg2: memref<1x4x4x256xf32, #tpu.memory_space<vmem>>, %arg3: memref<16x8x4xf32, #tpu.memory_space<vmem>>, %arg4: memref<8x1xf32, #tpu.memory_space<vmem>>, %arg5: memref<1x128xf32, #tpu.memory_space<vmem>>, %arg6: memref<1x8x128xf32, #tpu.memory_space<vmem>>) attributes {dimension_semantics = [#tpu.dimension_semantics<parallel>, #tpu.dimension_semantics<parallel>], iteration_bounds = array<i64: 2, 1>, scalar_prefetch = 0 : i64, scratch_operands = 0 : i64, tpu.core_type = #tpu.core_type<tc>, window_params = [{transform_indices = @transform_0, window_bounds = array<i64: 1, 4, 4, 256>}, {transform_indices = @transform_1, window_bounds = array<i64: 16, 8, 4>}, {transform_indices = @transform_2, window_bounds = array<i64: 8, 1>}, {pipeline_mode = #tpu.pipeline_mode<synchronous>, transform_indices = @transform_3, window_bounds = array<i64: 1, 128>}, {transform_indices = @transform_4, window_bounds = array<i64: 1, 8, 128>}]} {
    %c0 = arith.constant 0 : index
    %c0_0 = arith.constant 0 : index
    %c0_1 = arith.constant 0 : index
    %c0_2 = arith.constant 0 : index
    %0 = vector.load %arg2[%c0, %c0_0, %c0_1, %c0_2] : memref<1x4x4x256xf32, #tpu.memory_space<vmem>>, vector<1x1x4x128xf32>
    %1 = vector.shape_cast %0 : vector<1x1x4x128xf32> to vector<4x128xf32>
    %c0_3 = arith.constant 0 : index
    %c0_4 = arith.constant 0 : index
    %c0_5 = arith.constant 0 : index
    %2 = vector.load %arg3[%c0_3, %c0_4, %c0_5] : memref<16x8x4xf32, #tpu.memory_space<vmem>>, vector<1x8x4xf32>
    %3 = vector.shape_cast %2 : vector<1x8x4xf32> to vector<8x4xf32>
    %cst = arith.constant dense<0.000000e+00> : vector<8x128xf32>
    %4 = tpu.matmul %3, %1, %cst {dimension_numbers = #tpu.dot_dimension_numbers<[1], [0], [0], [1], [0, 0, 1, 1], [], []>} : vector<8x4xf32>, vector<4x128xf32>, vector<8x128xf32> -> vector<8x128xf32>
    %c0_6 = arith.constant 0 : index
    %c1 = arith.constant 1 : index
    %c0_7 = arith.constant 0 : index
    %c0_8 = arith.constant 0 : index
    %5 = vector.load %arg2[%c0_6, %c1, %c0_7, %c0_8] : memref<1x4x4x256xf32, #tpu.memory_space<vmem>>, vector<1x1x4x128xf32>
    %6 = vector.shape_cast %5 : vector<1x1x4x128xf32> to vector<4x128xf32>
    %c1_9 = arith.constant 1 : index
    %c0_10 = arith.constant 0 : index
    %c0_11 = arith.constant 0 : index
    %7 = vector.load %arg3[%c1_9, %c0_10, %c0_11] : memref<16x8x4xf32, #tpu.memory_space<vmem>>, vector<1x8x4xf32>
    %8 = vector.shape_cast %7 : vector<1x8x4xf32> to vector<8x4xf32>
    %cst_12 = arith.constant dense<0.000000e+00> : vector<8x128xf32>
    %9 = tpu.matmul %8, %6, %cst_12 {dimension_numbers = #tpu.dot_dimension_numbers<[1], [0], [0], [1], [0, 0, 1, 1], [], []>} : vector<8x4xf32>, vector<4x128xf32>, vector<8x128xf32> -> vector<8x128xf32>
    %10 = arith.addf %4, %9 : vector<8x128xf32>
    %c0_13 = arith.constant 0 : index
    %c0_14 = arith.constant 0 : index
    %c0_15 = arith.constant 0 : index
    %c1_16 = arith.constant 1 : index
    %11 = vector.load %arg2[%c0_13, %c0_14, %c0_15, %c1_16] : memref<1x4x4x256xf32, #tpu.memory_space<vmem>>, vector<1x1x4x128xf32>
    %12 = vector.shape_cast %11 : vector<1x1x4x128xf32> to vector<4x128xf32>
    %c2 = arith.constant 2 : index
    %c0_17 = arith.constant 0 : index
    %c0_18 = arith.constant 0 : index
    %13 = vector.load %arg3[%c2, %c0_17, %c0_18] : memref<16x8x4xf32, #tpu.memory_space<vmem>>, vector<1x8x4xf32>
    %14 = vector.shape_cast %13 : vector<1x8x4xf32> to vector<8x4xf32>
    %cst_19 = arith.constant dense<0.000000e+00> : vector<8x128xf32>
    %15 = tpu.matmul %14, %12, %cst_19 {dimension_numbers = #tpu.dot_dimension_numbers<[1], [0], [0], [1], [0, 0, 1, 1], [], []>} : vector<8x4xf32>, vector<4x128xf32>, vector<8x128xf32> -> vector<8x128xf32>
    %16 = arith.addf %10, %15 : vector<8x128xf32>
    %c0_20 = arith.constant 0 : index
    %c1_21 = arith.constant 1 : index
    %c0_22 = arith.constant 0 : index
    %c1_23 = arith.constant 1 : index
    %17 = vector.load %arg2[%c0_20, %c1_21, %c0_22, %c1_23] : memref<1x4x4x256xf32, #tpu.memory_space<vmem>>, vector<1x1x4x128xf32>
    %18 = vector.shape_cast %17 : vector<1x1x4x128xf32> to vector<4x128xf32>
    %c3 = arith.constant 3 : index
    %c0_24 = arith.constant 0 : index
    %c0_25 = arith.constant 0 : index
    %19 = vector.load %arg3[%c3, %c0_24, %c0_25] : memref<16x8x4xf32, #tpu.memory_space<vmem>>, vector<1x8x4xf32>
    %20 = vector.shape_cast %19 : vector<1x8x4xf32> to vector<8x4xf32>
    %cst_26 = arith.constant dense<0.000000e+00> : vector<8x128xf32>
    %21 = tpu.matmul %20, %18, %cst_26 {dimension_numbers = #tpu.dot_dimension_numbers<[1], [0], [0], [1], [0, 0, 1, 1], [], []>} : vector<8x4xf32>, vector<4x128xf32>, vector<8x128xf32> -> vector<8x128xf32>
    %22 = arith.addf %16, %21 : vector<8x128xf32>
    %c0_27 = arith.constant 0 : index
    %c2_28 = arith.constant 2 : index
    %c0_29 = arith.constant 0 : index
    %c0_30 = arith.constant 0 : index
    %23 = vector.load %arg2[%c0_27, %c2_28, %c0_29, %c0_30] : memref<1x4x4x256xf32, #tpu.memory_space<vmem>>, vector<1x1x4x128xf32>
    %24 = vector.shape_cast %23 : vector<1x1x4x128xf32> to vector<4x128xf32>
    %c4 = arith.constant 4 : index
    %c0_31 = arith.constant 0 : index
    %c0_32 = arith.constant 0 : index
    %25 = vector.load %arg3[%c4, %c0_31, %c0_32] : memref<16x8x4xf32, #tpu.memory_space<vmem>>, vector<1x8x4xf32>
    %26 = vector.shape_cast %25 : vector<1x8x4xf32> to vector<8x4xf32>
    %cst_33 = arith.constant dense<0.000000e+00> : vector<8x128xf32>
    %27 = tpu.matmul %26, %24, %cst_33 {dimension_numbers = #tpu.dot_dimension_numbers<[1], [0], [0], [1], [0, 0, 1, 1], [], []>} : vector<8x4xf32>, vector<4x128xf32>, vector<8x128xf32> -> vector<8x128xf32>
    %28 = arith.addf %22, %27 : vector<8x128xf32>
    %c0_34 = arith.constant 0 : index
    %c3_35 = arith.constant 3 : index
    %c0_36 = arith.constant 0 : index
    %c0_37 = arith.constant 0 : index
    %29 = vector.load %arg2[%c0_34, %c3_35, %c0_36, %c0_37] : memref<1x4x4x256xf32, #tpu.memory_space<vmem>>, vector<1x1x4x128xf32>
    %30 = vector.shape_cast %29 : vector<1x1x4x128xf32> to vector<4x128xf32>
    %c5 = arith.constant 5 : index
    %c0_38 = arith.constant 0 : index
    %c0_39 = arith.constant 0 : index
    %31 = vector.load %arg3[%c5, %c0_38, %c0_39] : memref<16x8x4xf32, #tpu.memory_space<vmem>>, vector<1x8x4xf32>
    %32 = vector.shape_cast %31 : vector<1x8x4xf32> to vector<8x4xf32>
    %cst_40 = arith.constant dense<0.000000e+00> : vector<8x128xf32>
    %33 = tpu.matmul %32, %30, %cst_40 {dimension_numbers = #tpu.dot_dimension_numbers<[1], [0], [0], [1], [0, 0, 1, 1], [], []>} : vector<8x4xf32>, vector<4x128xf32>, vector<8x128xf32> -> vector<8x128xf32>
    %34 = arith.addf %28, %33 : vector<8x128xf32>
    %c0_41 = arith.constant 0 : index
    %c2_42 = arith.constant 2 : index
    %c0_43 = arith.constant 0 : index
    %c1_44 = arith.constant 1 : index
    %35 = vector.load %arg2[%c0_41, %c2_42, %c0_43, %c1_44] : memref<1x4x4x256xf32, #tpu.memory_space<vmem>>, vector<1x1x4x128xf32>
    %36 = vector.shape_cast %35 : vector<1x1x4x128xf32> to vector<4x128xf32>
    %c6 = arith.constant 6 : index
    %c0_45 = arith.constant 0 : index
    %c0_46 = arith.constant 0 : index
    %37 = vector.load %arg3[%c6, %c0_45, %c0_46] : memref<16x8x4xf32, #tpu.memory_space<vmem>>, vector<1x8x4xf32>
    %38 = vector.shape_cast %37 : vector<1x8x4xf32> to vector<8x4xf32>
    %cst_47 = arith.constant dense<0.000000e+00> : vector<8x128xf32>
    %39 = tpu.matmul %38, %36, %cst_47 {dimension_numbers = #tpu.dot_dimension_numbers<[1], [0], [0], [1], [0, 0, 1, 1], [], []>} : vector<8x4xf32>, vector<4x128xf32>, vector<8x128xf32> -> vector<8x128xf32>
    %40 = arith.addf %34, %39 : vector<8x128xf32>
    %c0_48 = arith.constant 0 : index
    %c3_49 = arith.constant 3 : index
    %c0_50 = arith.constant 0 : index
    %c1_51 = arith.constant 1 : index
    %41 = vector.load %arg2[%c0_48, %c3_49, %c0_50, %c1_51] : memref<1x4x4x256xf32, #tpu.memory_space<vmem>>, vector<1x1x4x128xf32>
    %42 = vector.shape_cast %41 : vector<1x1x4x128xf32> to vector<4x128xf32>
    %c7 = arith.constant 7 : index
    %c0_52 = arith.constant 0 : index
    %c0_53 = arith.constant 0 : index
    %43 = vector.load %arg3[%c7, %c0_52, %c0_53] : memref<16x8x4xf32, #tpu.memory_space<vmem>>, vector<1x8x4xf32>
    %44 = vector.shape_cast %43 : vector<1x8x4xf32> to vector<8x4xf32>
    %cst_54 = arith.constant dense<0.000000e+00> : vector<8x128xf32>
    %45 = tpu.matmul %44, %42, %cst_54 {dimension_numbers = #tpu.dot_dimension_numbers<[1], [0], [0], [1], [0, 0, 1, 1], [], []>} : vector<8x4xf32>, vector<4x128xf32>, vector<8x128xf32> -> vector<8x128xf32>
    %46 = arith.addf %40, %45 : vector<8x128xf32>
    %c0_55 = arith.constant 0 : index
    %c0_56 = arith.constant 0 : index
    %c0_57 = arith.constant 0 : index
    %c9 = arith.constant 9 : index
    %47 = vector.load %arg2[%c0_55, %c0_56, %c0_57, %c9] : memref<1x4x4x256xf32, #tpu.memory_space<vmem>>, vector<1x1x4x128xf32>
    %48 = vector.shape_cast %47 : vector<1x1x4x128xf32> to vector<4x128xf32>
    %c8 = arith.constant 8 : index
    %c0_58 = arith.constant 0 : index
    %c0_59 = arith.constant 0 : index
    %49 = vector.load %arg3[%c8, %c0_58, %c0_59] : memref<16x8x4xf32, #tpu.memory_space<vmem>>, vector<1x8x4xf32>
    %50 = vector.shape_cast %49 : vector<1x8x4xf32> to vector<8x4xf32>
    %cst_60 = arith.constant dense<0.000000e+00> : vector<8x128xf32>
    %51 = tpu.matmul %50, %48, %cst_60 {dimension_numbers = #tpu.dot_dimension_numbers<[1], [0], [0], [1], [0, 0, 1, 1], [], []>} : vector<8x4xf32>, vector<4x128xf32>, vector<8x128xf32> -> vector<8x128xf32>
    %52 = arith.addf %46, %51 : vector<8x128xf32>
    %c0_61 = arith.constant 0 : index
    %c1_62 = arith.constant 1 : index
    %c0_63 = arith.constant 0 : index
    %c9_64 = arith.constant 9 : index
    %53 = vector.load %arg2[%c0_61, %c1_62, %c0_63, %c9_64] : memref<1x4x4x256xf32, #tpu.memory_space<vmem>>, vector<1x1x4x128xf32>
    %54 = vector.shape_cast %53 : vector<1x1x4x128xf32> to vector<4x128xf32>
    %c9_65 = arith.constant 9 : index
    %c0_66 = arith.constant 0 : index
    %c0_67 = arith.constant 0 : index
    %55 = vector.load %arg3[%c9_65, %c0_66, %c0_67] : memref<16x8x4xf32, #tpu.memory_space<vmem>>, vector<1x8x4xf32>
    %56 = vector.shape_cast %55 : vector<1x8x4xf32> to vector<8x4xf32>
    %cst_68 = arith.constant dense<0.000000e+00> : vector<8x128xf32>
    %57 = tpu.matmul %56, %54, %cst_68 {dimension_numbers = #tpu.dot_dimension_numbers<[1], [0], [0], [1], [0, 0, 1, 1], [], []>} : vector<8x4xf32>, vector<4x128xf32>, vector<8x128xf32> -> vector<8x128xf32>
    %58 = arith.addf %52, %57 : vector<8x128xf32>
    %c0_69 = arith.constant 0 : index
    %c0_70 = arith.constant 0 : index
    %c0_71 = arith.constant 0 : index
    %c10 = arith.constant 10 : index
    %59 = vector.load %arg2[%c0_69, %c0_70, %c0_71, %c10] : memref<1x4x4x256xf32, #tpu.memory_space<vmem>>, vector<1x1x4x128xf32>
    %60 = vector.shape_cast %59 : vector<1x1x4x128xf32> to vector<4x128xf32>
    %c10_72 = arith.constant 10 : index
    %c0_73 = arith.constant 0 : index
    %c0_74 = arith.constant 0 : index
    %61 = vector.load %arg3[%c10_72, %c0_73, %c0_74] : memref<16x8x4xf32, #tpu.memory_space<vmem>>, vector<1x8x4xf32>
    %62 = vector.shape_cast %61 : vector<1x8x4xf32> to vector<8x4xf32>
    %cst_75 = arith.constant dense<0.000000e+00> : vector<8x128xf32>
    %63 = tpu.matmul %62, %60, %cst_75 {dimension_numbers = #tpu.dot_dimension_numbers<[1], [0], [0], [1], [0, 0, 1, 1], [], []>} : vector<8x4xf32>, vector<4x128xf32>, vector<8x128xf32> -> vector<8x128xf32>
    %64 = arith.addf %58, %63 : vector<8x128xf32>
    %c0_76 = arith.constant 0 : index
    %c1_77 = arith.constant 1 : index
    %c0_78 = arith.constant 0 : index
    %c10_79 = arith.constant 10 : index
    %65 = vector.load %arg2[%c0_76, %c1_77, %c0_78, %c10_79] : memref<1x4x4x256xf32, #tpu.memory_space<vmem>>, vector<1x1x4x128xf32>
    %66 = vector.shape_cast %65 : vector<1x1x4x128xf32> to vector<4x128xf32>
    %c11 = arith.constant 11 : index
    %c0_80 = arith.constant 0 : index
    %c0_81 = arith.constant 0 : index
    %67 = vector.load %arg3[%c11, %c0_80, %c0_81] : memref<16x8x4xf32, #tpu.memory_space<vmem>>, vector<1x8x4xf32>
    %68 = vector.shape_cast %67 : vector<1x8x4xf32> to vector<8x4xf32>
    %cst_82 = arith.constant dense<0.000000e+00> : vector<8x128xf32>
    %69 = tpu.matmul %68, %66, %cst_82 {dimension_numbers = #tpu.dot_dimension_numbers<[1], [0], [0], [1], [0, 0, 1, 1], [], []>} : vector<8x4xf32>, vector<4x128xf32>, vector<8x128xf32> -> vector<8x128xf32>
    %70 = arith.addf %64, %69 : vector<8x128xf32>
    %c0_83 = arith.constant 0 : index
    %c2_84 = arith.constant 2 : index
    %c0_85 = arith.constant 0 : index
    %c9_86 = arith.constant 9 : index
    %71 = vector.load %arg2[%c0_83, %c2_84, %c0_85, %c9_86] : memref<1x4x4x256xf32, #tpu.memory_space<vmem>>, vector<1x1x4x128xf32>
    %72 = vector.shape_cast %71 : vector<1x1x4x128xf32> to vector<4x128xf32>
    %c12 = arith.constant 12 : index
    %c0_87 = arith.constant 0 : index
    %c0_88 = arith.constant 0 : index
    %73 = vector.load %arg3[%c12, %c0_87, %c0_88] : memref<16x8x4xf32, #tpu.memory_space<vmem>>, vector<1x8x4xf32>
    %74 = vector.shape_cast %73 : vector<1x8x4xf32> to vector<8x4xf32>
    %cst_89 = arith.constant dense<0.000000e+00> : vector<8x128xf32>
    %75 = tpu.matmul %74, %72, %cst_89 {dimension_numbers = #tpu.dot_dimension_numbers<[1], [0], [0], [1], [0, 0, 1, 1], [], []>} : vector<8x4xf32>, vector<4x128xf32>, vector<8x128xf32> -> vector<8x128xf32>
    %76 = arith.addf %70, %75 : vector<8x128xf32>
    %c0_90 = arith.constant 0 : index
    %c3_91 = arith.constant 3 : index
    %c0_92 = arith.constant 0 : index
    %c9_93 = arith.constant 9 : index
    %77 = vector.load %arg2[%c0_90, %c3_91, %c0_92, %c9_93] : memref<1x4x4x256xf32, #tpu.memory_space<vmem>>, vector<1x1x4x128xf32>
    %78 = vector.shape_cast %77 : vector<1x1x4x128xf32> to vector<4x128xf32>
    %c13 = arith.constant 13 : index
    %c0_94 = arith.constant 0 : index
    %c0_95 = arith.constant 0 : index
    %79 = vector.load %arg3[%c13, %c0_94, %c0_95] : memref<16x8x4xf32, #tpu.memory_space<vmem>>, vector<1x8x4xf32>
    %80 = vector.shape_cast %79 : vector<1x8x4xf32> to vector<8x4xf32>
    %cst_96 = arith.constant dense<0.000000e+00> : vector<8x128xf32>
    %81 = tpu.matmul %80, %78, %cst_96 {dimension_numbers = #tpu.dot_dimension_numbers<[1], [0], [0], [1], [0, 0, 1, 1], [], []>} : vector<8x4xf32>, vector<4x128xf32>, vector<8x128xf32> -> vector<8x128xf32>
    %82 = arith.addf %76, %81 : vector<8x128xf32>
    %c0_97 = arith.constant 0 : index
    %c2_98 = arith.constant 2 : index
    %c0_99 = arith.constant 0 : index
    %c10_100 = arith.constant 10 : index
    %83 = vector.load %arg2[%c0_97, %c2_98, %c0_99, %c10_100] : memref<1x4x4x256xf32, #tpu.memory_space<vmem>>, vector<1x1x4x128xf32>
    %84 = vector.shape_cast %83 : vector<1x1x4x128xf32> to vector<4x128xf32>
    %c14 = arith.constant 14 : index
    %c0_101 = arith.constant 0 : index
    %c0_102 = arith.constant 0 : index
    %85 = vector.load %arg3[%c14, %c0_101, %c0_102] : memref<16x8x4xf32, #tpu.memory_space<vmem>>, vector<1x8x4xf32>
    %86 = vector.shape_cast %85 : vector<1x8x4xf32> to vector<8x4xf32>
    %cst_103 = arith.constant dense<0.000000e+00> : vector<8x128xf32>
    %87 = tpu.matmul %86, %84, %cst_103 {dimension_numbers = #tpu.dot_dimension_numbers<[1], [0], [0], [1], [0, 0, 1, 1], [], []>} : vector<8x4xf32>, vector<4x128xf32>, vector<8x128xf32> -> vector<8x128xf32>
    %88 = arith.addf %82, %87 : vector<8x128xf32>
    %c0_104 = arith.constant 0 : index
    %c3_105 = arith.constant 3 : index
    %c0_106 = arith.constant 0 : index
    %c10_107 = arith.constant 10 : index
    %89 = vector.load %arg2[%c0_104, %c3_105, %c0_106, %c10_107] : memref<1x4x4x256xf32, #tpu.memory_space<vmem>>, vector<1x1x4x128xf32>
    %90 = vector.shape_cast %89 : vector<1x1x4x128xf32> to vector<4x128xf32>
    %c15 = arith.constant 15 : index
    %c0_108 = arith.constant 0 : index
    %c0_109 = arith.constant 0 : index
    %91 = vector.load %arg3[%c15, %c0_108, %c0_109] : memref<16x8x4xf32, #tpu.memory_space<vmem>>, vector<1x8x4xf32>
    %92 = vector.shape_cast %91 : vector<1x8x4xf32> to vector<8x4xf32>
    %cst_110 = arith.constant dense<0.000000e+00> : vector<8x128xf32>
    %93 = tpu.matmul %92, %90, %cst_110 {dimension_numbers = #tpu.dot_dimension_numbers<[1], [0], [0], [1], [0, 0, 1, 1], [], []>} : vector<8x4xf32>, vector<4x128xf32>, vector<8x128xf32> -> vector<8x128xf32>
    %94 = arith.addf %88, %93 : vector<8x128xf32>
    %c0_111 = arith.constant 0 : index
    %c0_112 = arith.constant 0 : index
    %95 = vector.load %arg4[%c0_111, %c0_112] : memref<8x1xf32, #tpu.memory_space<vmem>>, vector<8x1xf32>
    %96 = vector.broadcast %95 : vector<8x1xf32> to vector<8x128xf32>
    %97 = arith.addf %94, %96 : vector<8x128xf32>
    %c0_113 = arith.constant 0 : index
    %c0_114 = arith.constant 0 : index
    %98 = vector.load %arg5[%c0_113, %c0_114] : memref<1x128xf32, #tpu.memory_space<vmem>>, vector<1x128xf32>
    %99 = vector.broadcast %98 : vector<1x128xf32> to vector<8x128xf32>
    %100 = arith.mulf %97, %99 : vector<8x128xf32>
    %cst_115 = arith.constant dense<0.000000e+00> : vector<8xf32>
    %101 = vector.multi_reduction <add>, %100, %cst_115 [1] : vector<8x128xf32> to vector<8xf32>
    %102 = vector.shape_cast %101 : vector<8xf32> to vector<8x1xf32>
    %cst_116 = arith.constant 1.562500e-02 : f32
    %103 = vector.broadcast %cst_116 : f32 to vector<8x1xf32>
    %104 = arith.mulf %102, %103 : vector<8x1xf32>
    %105 = vector.broadcast %104 : vector<8x1xf32> to vector<8x128xf32>
    %106 = arith.subf %97, %105 : vector<8x128xf32>
    %107 = arith.mulf %106, %106 : vector<8x128xf32>
    %108 = vector.broadcast %98 : vector<1x128xf32> to vector<8x128xf32>
    %109 = arith.mulf %107, %108 : vector<8x128xf32>
    %cst_117 = arith.constant dense<0.000000e+00> : vector<8xf32>
    %110 = vector.multi_reduction <add>, %109, %cst_117 [1] : vector<8x128xf32> to vector<8xf32>
    %111 = vector.shape_cast %110 : vector<8xf32> to vector<8x1xf32>
    %cst_118 = arith.constant 1.562500e-02 : f32
    %112 = vector.broadcast %cst_118 : f32 to vector<8x1xf32>
    %113 = arith.mulf %111, %112 : vector<8x1xf32>
    %cst_119 = arith.constant 9.99999974E-6 : f32
    %114 = vector.broadcast %cst_119 : f32 to vector<8x1xf32>
    %115 = arith.addf %113, %114 : vector<8x1xf32>
    %116 = math.rsqrt %115 : vector<8x1xf32>
    %117 = vector.broadcast %116 : vector<8x1xf32> to vector<8x128xf32>
    %118 = arith.mulf %106, %117 : vector<8x128xf32>
    %cst_120 = arith.constant 0.000000e+00 : f32
    %119 = vector.broadcast %cst_120 : f32 to vector<8x128xf32>
    %120 = arith.cmpf oge, %118, %119 : vector<8x128xf32>
    %cst_121 = arith.constant 2.000000e-01 : f32
    %121 = vector.broadcast %cst_121 : f32 to vector<8x128xf32>
    %122 = arith.mulf %121, %118 : vector<8x128xf32>
    %123 = arith.select %120, %118, %122 : vector<8x128xi1>, vector<8x128xf32>
    %c0_122 = arith.constant 0 : index
    %c0_123 = arith.constant 0 : index
    %c0_124 = arith.constant 0 : index
    %124 = vector.load %arg6[%c0_122, %c0_123, %c0_124] : memref<1x8x128xf32, #tpu.memory_space<vmem>>, vector<1x8x128xf32>
    %125 = vector.shape_cast %124 : vector<1x8x128xf32> to vector<8x128xf32>
    %126 = vector.shape_cast %123 : vector<8x128xf32> to vector<1x8x128xf32>
    tpu.vector_store %arg6[%c0_122, %c0_123, %c0_124], %126 {strides = array<i32>} : memref<1x8x128xf32, #tpu.memory_space<vmem>>, vector<1x8x128xf32>,
    return
  }
  func.func @transform_0(%arg0: i32, %arg1: i32) -> (i32, i32, i32, i32) {
    %c0_i32 = arith.constant 0 : i32
    %c0_i32_0 = arith.constant 0 : i32
    %c0_i32_1 = arith.constant 0 : i32
    %c0_i32_2 = arith.constant 0 : i32
    return %arg0, %c0_i32, %c0_i32_0, %c0_i32_1 : i32, i32, i32, i32
  }
  func.func @transform_1(%arg0: i32, %arg1: i32) -> (i32, i32, i32) {
    %c0_i32 = arith.constant 0 : i32
    %c0_i32_0 = arith.constant 0 : i32
    %c0_i32_1 = arith.constant 0 : i32
    return %c0_i32, %arg1, %c0_i32_0 : i32, i32, i32
  }
  func.func @transform_2(%arg0: i32, %arg1: i32) -> (i32, i32) {
    %c0_i32 = arith.constant 0 : i32
    %c0_i32_0 = arith.constant 0 : i32
    return %arg1, %c0_i32 : i32, i32
  }
  func.func @transform_3(%arg0: i32, %arg1: i32) -> (i32, i32) {
    %c0_i32 = arith.constant 0 : i32
    %c0_i32_0 = arith.constant 0 : i32
    %c0_i32_1 = arith.constant 0 : i32
    return %c0_i32, %c0_i32_0 : i32, i32
  }
  func.func @transform_4(%arg0: i32, %arg1: i32) -> (i32, i32, i32) {
    %c0_i32 = arith.constant 0 : i32
    %c0_i32_0 = arith.constant 0 : i32
    return %arg0, %arg1, %c0_i32 : i32, i32, i32
  }
}

</mosaic_0001>

<bundles_post_ra>
// kernel: tpu_custom_call.1
= control target key start
LH: loop header
LB: loop body
LE: loop exit
PB: predicated region body
PF: predicated region fallthrough
CT: control target
= control target key end

     0   :  { %9 = vsyncpa [#allocation3], 0  ;;  %s2371_s0 = inlined_call_operand.vmem [shape: f32[2,4,4,256], index: 0, kind: input, shape index: {}]   ;;  %s2372_s1 = inlined_call_operand.vmem [shape: f32[16,8,4], index: 1, kind: input, shape index: {}]   ;;  %s2373_s2 = inlined_call_operand.vmem [shape: f32[8,1], index: 2, kind: input, shape index: {}]   ;;  %s2374_s3 = inlined_call_operand.vmem [shape: f32[1,128], index: 3, kind: input, shape index: {}]   ;;  %s2375_s4 = inlined_call_operand.hbm [shape: f32[2,8,128], index: 4, kind: output, shape index: {}]  }
   0x1   :  { %11 = vsyncpa [#allocation3 + $0x1], 0  ;;  %s2110_s15 = smov 0   ;;  %s2112_s16 = smov 0  }
   0x2   :  { %s2114_s17 = smov 0   ;;  %s2116_s18 = smov 0  }
   0x3   :  { %s2118_s19 = smov 0   ;;  %s2120_s20 = smov 0  }
   0x4 LB: > { %s1745_s21 = sadd.s32 4294967295, %s2076_s20   ;;  %s1746_s22 = sadd.s32 4294967294, %s2076_s20   ;;  %s2076_s20 = sphi %s2120_s20, %s17_s20   ;;  %s2072_s19 = sphi %s2118_s19, %s2382_s19   ;;  %s2068_s18 = sphi %s2116_s18, %s2381_s18   ;;  %s2064_s17 = sphi %s2114_s17, %s2380_s17   ;;  %s2060_s16 = sphi %s2112_s16, %s2379_s16   ;;  %s2056_s15 = sphi %s2110_s15, %s2378_s15  }
   0x5   : > { %s29_s23 = sadd.s32 1, %s2072_s19  ;;  %s137_s24 = sadd.s32 1, %s2064_s17 }
   0x6   : > { %p31_p0 = scmp.ge.s32.totalorder %s29_s23, 2  ;;  %p147_p1 = scmp.ne.s32.totalorder %s2064_s17, %s2060_s16 }
   0x7   : > { %p148_p2 = scmp.eq.s32.totalorder %s1745_s21, 1  ;;  %p153_p3 = scmp.ne.s32.totalorder %s2060_s16, %s2056_s15 }
   0x8   : > { %s2384_s23 = smov (%p31_p0, %s29_s23), 0  ;;  %p154_p5 = scmp.eq.s32.totalorder %s1746_s22, 1 }
   0x9   : > { %p2150_p4 = por %p148_p2, %p147_p1  ;;  %s132_s26 = ssub.s32 %s2072_s19, %s2384_s23 }
   0xa   : > { %p1751_p6 = scmp.ge.s32.totalorder %s2076_s20, 1  ;;  %p135_p7 = scmp.eq.s32.totalorder %s132_s26, 0 }
   0xb   : > { %p2157_p8 = por %p154_p5, %p153_p3  ;;  %p197_p9 = scmp.lt.s32.totalorder %s2076_s20, 3 }
   0xc   : > { %s2163_s28 = scalar_select %p135_p7, %s2064_s17, %s137_s24  }
   0xd   : > { %p198_p10 = pnand %p1751_p6, %p197_p9 }
   0xe   : > { %p231_p11 = scmp.lt.s32.totalorder (!%p198_p10), %s2068_s18, 1  ;;  %s2080_s10 = smov (!%p198_p10), 127  }
   0xf   : > { %201 = sbr.rel (%p198_p10) target bundleno = 705 (0x2c1), region = 36  ;;  %s2081_s13 = smov (!%p198_p10), 119  }
  0x10   : > { %s2082_s14 = smov (!%p198_p10), 118   ;;  %s228_s21 = sand.u32 (!%p198_p10), 1, %s2060_s16  }
  0x11   : > { %s1752_s22 = sshll.u32 (!%p198_p10), %s228_s21, 3  ;;  %s1816_s24 = sshll.u32 (!%p198_p10), %s2068_s18, 7 }
  0x12   : > { %s230_s26 = scalar_lea.vmem (!%p198_p10), [#allocation2], %s1752_s22  ;;  %s2331_s6 = scalar_lea.hbm (!%p198_p10), %s2375_s4, %s1816_s24 }
  0x13   : > { %s2084_s9 = smov (!%p198_p10), [#allocation2]  }
  0x14   : > { %v2078_v0 = vmov 0.0   ;;  %s232_s29 = scalar_select %p231_p11, %s2068_s18, 1  ;;  %vm2079_vm0 = vmmov 0   ;;  %vm254_vm1 = vcmask 1043456   ;;  %v245_v3 = vld [vmem:[%s2372_s1] sm:$0xff]  ;;  %vm250_vm2 = vcmask 31744  }
  0x15   : > { %1857 = vmatprep.subr.mxu1 %v2078_v0  ;;  %1852 = vmatprep.subr.mxu0 %v2078_v0  ;;  %v1756_v6 = vld [vmem:[%s2372_s1 + $0x8] sm:$0xff]  ;;  %v2083_v13 = vmov 0   ;;  %v1601_v14 = vld [vmem:[%s2373_s2] sm:$0xff]  ;;  %vm413_vm3 = vcmask 1039360   ;;  %v1765_v19 = vld [vmem:[%s2372_s1 + $0x18] sm:$0xff]  ;;  %vm920_vm4 = vcmask 973824  }
  0x16   : > { %1859 = vmatprep.mubr.msk.f32.mxu1 %vm2079_vm0, %v2078_v0  ;;  %1854 = vmatprep.mubr.msk.f32.mxu0 %vm2079_vm0, %v2078_v0  ;;  %s1819_s30 = sshll.u32 %s232_s29, 5  ;;  %v1761_v24 = vld [vmem:[%s2372_s1 + $0x10] sm:$0xff]  ;;  %v1773_v27 = vld [vmem:[%s2372_s1 + $0x28] sm:$0xff]  ;;  %v1769_v30 = vld [vmem:[%s2372_s1 + $0x20] sm:$0xff]  ;;  %vm1093_vm5 = vcmask 965632   ;;  %s1647_s29 = sshll.u32 %s230_s26, 4  ;;  %s1648_s29 = int_to_ptr.vmem [resolvable:$true] %s1647_s29 }
  0x17   : > { %s2176_s7 = scalar_lea.vmem %s2371_s0, %s1819_s30  ;;  %1993 = vset.pattern.permute.xlu0 %v2083_v13  ;;  %v1781_v32 = vld [vmem:[%s2372_s1 + $0x38] sm:$0xff]  ;;  %v1777_v36 = vld [vmem:[%s2372_s1 + $0x30] sm:$0xff]  ;;  %v1784_v40 = vld [vmem:[%s2372_s1 + $0x40] sm:$0xff]  ;;  %s2000_s8 = scalar_lea.vmem %s1648_s29, 128 }
  0x18   : > { %v1764_v1 = vld [vmem:[%s2176_s7 + $0x8] sm:$0xff]  ;;  %v404_v2 = vld [vmem:[%s2176_s7] sm:$0xff]  ;;  %v1776_v7 = vld [vmem:[%s2176_s7 + $0x10] sm:$0xff]  ;;  %p2001_p12 = scmp.ne.s32.totalorder %s1648_s29, %s2000_s8  ;;  %s2004_s18 = sshll.u32 %s2084_s9, 4  ;;  %s2005_s18 = int_to_ptr.vmem [resolvable:$false] %s2004_s18 }
  0x19   : > { %496 = vrot.lane.b32.xlu1 %v1764_v1, %s2080_s10  ;;  %v495_v4 = vcombine.high %v1764_v1, %v1764_v1  ;;  %409 = vrot.lane.b32.xlu0 %v404_v2, %s2080_s10  ;;  %v244_v5 = vld [vmem:[%s2176_s7] sm:$0xf]  ;;  %v1755_v8 = vld [vmem:[%s2176_s7 + $0x8] sm:$0xf]  ;;  %v408_v9 = vcombine.high %v404_v2, %v404_v2  ;;  %v743_v10 = vcombine.high %v1776_v7, %v1776_v7  ;;  %p2007_p1 = scmp.lt.s32.totalorder %s1648_s29, %s2005_s18 }
  0x1a   : > { %1858 = vmatpush3.msk.msra.mxu1 %vm254_vm1, %v244_v5  ;;  %1853 = vmatpush3.msk.msra.mxu0 %vm254_vm1, %v1755_v8  ;;  %v1780_v11 = vld [vmem:[%s2176_s7 + $0x18] sm:$0xff]  ;;  %v1768_v26 = vld [vmem:[%s2176_s7 + $0x10] sm:$0xf]  ;;  %v1788_v42 = vld [vmem:[%s2372_s1 + $0x48] sm:$0xff]  ;;  %p2002_p13 = pnand %p2001_p12, %p2150_p4 }
  0x1b   : > { %1867 = vmatprep.subr.mxu1 %v2078_v0  ;;  %1860 = vmatmul.mubr.msk.f32.vlgmr.msra.gmra.mxu1 %vm250_vm2, %v245_v3  ;;  %v829_v12 = vcombine.high %v1780_v11, %v1780_v11  ;;  %v1772_v21 = vld [vmem:[%s2176_s7 + $0x18] sm:$0xf]  ;;  %v1791_v45 = vld [vmem:[%s2372_s1 + $0x50] sm:$0xff]  ;;  %v1799_v53 = vld [vmem:[%s2372_s1 + $0x60] sm:$0xff]  ;;  %s1633_s7 = scalar_lea.sflag [#allocation3], %s228_s21 }
  0x1c   : > { %1855 = vmatmul.mubr.msk.f32.vlgmr.msra.gmra.mxu0 %vm250_vm2, %v1756_v6  ;;  %1862 = vmatprep.subr.mxu0 %v2078_v0  ;;  %v1795_v49 = vld [vmem:[%s2372_s1 + $0x58] sm:$0xff]  ;;  %v1803_v57 = vld [vmem:[%s2372_s1 + $0x68] sm:$0xff]  ;;  %v1807_v61 = vld [vmem:[%s2372_s1 + $0x70] sm:$0xff]  ;;  %p2003_p0 = pneg %p2002_p13 }
  0x1d   : > { %498 = vrot.lane.b32.xlu1 %v495_v4, %s2080_s10  ;;  %744 = vrot.lane.b32.xlu0 %v1776_v7, %s2080_s10 }
  0x1e   : > { %1869 = vmatprep.mubr.msk.f32.mxu1 %vm2079_vm0, %v2078_v0  ;;  %1864 = vmatprep.mubr.msk.f32.mxu0 %vm2079_vm0, %v2078_v0 }
  0x21   : > { %746 = vrot.lane.b32.xlu1 %v743_v10, %s2080_s10  ;;  %411 = vrot.lane.b32.xlu0 %v408_v9, %s2080_s10 }
  0x25   : > { %832 = vrot.lane.b32.xlu1 %v829_v12, %s2080_s10  ;;  %830 = vrot.lane.b32.xlu0 %v1780_v11, %s2080_s10  ;;  %s2006_s10 = scalar_lea.vmem %s2005_s18, 256 }
  0x26   : > { %p2008_p2 = scmp.lt.s32.totalorder %s2006_s10, %s2000_s8 }
  0x28   : > { %p2009_p3 = por %p2008_p2, %p2007_p1 }
  0x29   : > { %918 = vrot.lane.b32.xlu1 %v408_v9, %s2081_s13  ;;  %916 = vrot.lane.b32.xlu0 %v404_v2, %s2081_s13 }
  0x2a   : > { %p2010_p5 = pnand %p2009_p3, %p2003_p0 }
  0x2d   : > { %1005 = vrot.lane.b32.xlu1 %v495_v4, %s2081_s13  ;;  %1003 = vrot.lane.b32.xlu0 %v1764_v1, %s2081_s13 }
  0x31   : > { %1091 = vrot.lane.b32.xlu1 %v408_v9, %s2082_s14  ;;  %1089 = vrot.lane.b32.xlu0 %v404_v2, %s2082_s14  ;;  %v1811_v2 = vld [vmem:[%s2372_s1 + $0x78] sm:$0xff] }
  0x35   : > { %1178 = vrot.lane.b32.xlu1 %v495_v4, %s2082_s14  ;;  %1176 = vrot.lane.b32.xlu0 %v1764_v1, %s2082_s14 }
  0x39   : > { %1264 = vrot.lane.b32.xlu1 %v743_v10, %s2081_s13  ;;  %1262 = vrot.lane.b32.xlu0 %v1776_v7, %s2081_s13 }
  0x3d   : > { %1350 = vrot.lane.b32.xlu1 %v829_v12, %s2081_s13  ;;  %1348 = vrot.lane.b32.xlu0 %v1780_v11, %s2081_s13 }
  0x41   : > { %1436 = vrot.lane.b32.xlu1 %v743_v10, %s2082_s14  ;;  %1434 = vrot.lane.b32.xlu0 %v1776_v7, %s2082_s14 }
  0x45   : > { %1522 = vrot.lane.b32.xlu1 %v829_v12, %s2082_s14  ;;  %1520 = vrot.lane.b32.xlu0 %v1780_v11, %s2082_s14 }
  0x49   : > { %1604 = vperm.xlu0 %1993, %v1601_v14  }
  0x8b   : > { %v497_v15 = vpop.permute.xlu1 %496  ;;  %v410_v16 = vpop.permute.xlu0 %409 }
  0x8f   : > { %v499_v17 = vpop.permute.xlu1 %498  ;;  %v745_v18 = vpop.permute.xlu0 %744 }
  0x90   : > { %v500_v20 = vsel %vm413_vm3, %v497_v15, %v499_v17 }
  0x91   : > { %1868 = vmatpush3.msk.msra.mxu1 %vm254_vm1, %v500_v20 }
  0x92   : > { %1870 = vmatmul.mubr.msk.f32.vlgmr.msra.gmra.mxu1 %vm250_vm2, %v1765_v19  ;;  %1877 = vmatprep.subr.mxu1 %v2078_v0 }
  0x93   : > { %v747_v22 = vpop.permute.xlu1 %746  ;;  %v412_v23 = vpop.permute.xlu0 %411  ;;  %1878 = vmatpush3.msk.msra.mxu1 %vm254_vm1, %v1772_v21  ;;  %1879 = vmatprep.mubr.msk.f32.mxu1 %vm2079_vm0, %v2078_v0 }
  0x94   : > { %v414_v25 = vsel %vm413_vm3, %v410_v16, %v412_v23  ;;  %1887 = vmatprep.subr.mxu1 %v2078_v0  ;;  %v748_v33 = vsel %vm413_vm3, %v745_v18, %v747_v22 }
  0x95   : > { %1863 = vmatpush3.msk.msra.mxu0 %vm254_vm1, %v414_v25 }
  0x96   : > { %1865 = vmatmul.mubr.msk.f32.vlgmr.msra.gmra.mxu0 %vm250_vm2, %v1761_v24  ;;  %1872 = vmatprep.subr.mxu0 %v2078_v0 }
  0x97   : > { %v833_v28 = vpop.permute.xlu1 %832  ;;  %v831_v29 = vpop.permute.xlu0 %830  ;;  %1873 = vmatpush3.msk.msra.mxu0 %vm254_vm1, %v1768_v26  ;;  %1874 = vmatprep.mubr.msk.f32.mxu0 %vm2079_vm0, %v2078_v0 }
  0x98   : > { %v834_v31 = vsel %vm413_vm3, %v831_v29, %v833_v28  ;;  %1880 = vmatmul.mubr.msk.f32.vlgmr.msra.gmra.mxu1 %vm250_vm2, %v1773_v27  ;;  %1882 = vmatprep.subr.mxu0 %v2078_v0 }
  0x99   : > { %1888 = vmatpush3.msk.msra.mxu1 %vm254_vm1, %v834_v31  ;;  %1889 = vmatprep.mubr.msk.f32.mxu1 %vm2079_vm0, %v2078_v0 }
  0x9a   : > { %1875 = vmatmul.mubr.msk.f32.vlgmr.msra.gmra.mxu0 %vm250_vm2, %v1769_v30  ;;  %1897 = vmatprep.subr.mxu1 %v2078_v0 }
  0x9b   : > { %1883 = vmatpush3.msk.msra.mxu0 %vm254_vm1, %v748_v33  ;;  %v919_v34 = vpop.permute.xlu1 %918  ;;  %v917_v35 = vpop.permute.xlu0 %916  ;;  %1884 = vmatprep.mubr.msk.f32.mxu0 %vm2079_vm0, %v2078_v0 }
  0x9c   : > { %v921_v37 = vsel %vm920_vm4, %v917_v35, %v919_v34  ;;  %1892 = vmatprep.subr.mxu0 %v2078_v0  ;;  %1890 = vmatmul.mubr.msk.f32.vlgmr.msra.gmra.mxu1 %vm250_vm2, %v1781_v32 }
  0x9d   : > { %1899 = vmatprep.mubr.msk.f32.mxu1 %vm2079_vm0, %v2078_v0 }
  0x9e   : > { %1885 = vmatmul.mubr.msk.f32.vlgmr.msra.gmra.mxu0 %vm250_vm2, %v1777_v36 }
  0x9f   : > { %1893 = vmatpush3.msk.msra.mxu0 %vm254_vm1, %v921_v37  ;;  %v1006_v38 = vpop.permute.xlu1 %1005  ;;  %v1004_v39 = vpop.permute.xlu0 %1003  ;;  %1894 = vmatprep.mubr.msk.f32.mxu0 %vm2079_vm0, %v2078_v0 }
  0xa0   : > { %v1007_v41 = vsel %vm920_vm4, %v1004_v39, %v1006_v38  ;;  %1902 = vmatprep.subr.mxu0 %v2078_v0 }
  0xa1   : > { %1898 = vmatpush3.msk.msra.mxu1 %vm254_vm1, %v1007_v41 }
  0xa2   : > { %1895 = vmatmul.mubr.msk.f32.vlgmr.msra.gmra.mxu0 %vm250_vm2, %v1784_v40  ;;  %1907 = vmatprep.subr.mxu1 %v2078_v0 }
  0xa3   : > { %v1092_v43 = vpop.permute.xlu1 %1091  ;;  %v1090_v44 = vpop.permute.xlu0 %1089  ;;  %1900 = vmatmul.mubr.msk.f32.vlgmr.msra.gmra.mxu1 %vm250_vm2, %v1788_v42  ;;  %1904 = vmatprep.mubr.msk.f32.mxu0 %vm2079_vm0, %v2078_v0 }
  0xa4   : > { %v1094_v46 = vsel %vm1093_vm5, %v1090_v44, %v1092_v43  ;;  %1909 = vmatprep.mubr.msk.f32.mxu1 %vm2079_vm0, %v2078_v0 }
  0xa5   : > { %1903 = vmatpush3.msk.msra.mxu0 %vm254_vm1, %v1094_v46 }
  0xa6   : > { %1912 = vmatprep.subr.mxu0 %v2078_v0  ;;  %1905 = vmatmul.mubr.msk.f32.vlgmr.msra.gmra.mxu0 %vm250_vm2, %v1791_v45 }
  0xa7   : > { %v1179_v47 = vpop.permute.xlu1 %1178  ;;  %v1177_v48 = vpop.permute.xlu0 %1176  ;;  %1914 = vmatprep.mubr.msk.f32.mxu0 %vm2079_vm0, %v2078_v0 }
  0xa8   : > { %v1180_v50 = vsel %vm1093_vm5, %v1177_v48, %v1179_v47 }
  0xa9   : > { %1908 = vmatpush3.msk.msra.mxu1 %vm254_vm1, %v1180_v50 }
  0xaa   : > { %1917 = vmatprep.subr.mxu1 %v2078_v0  ;;  %1910 = vmatmul.mubr.msk.f32.vlgmr.msra.gmra.mxu1 %vm250_vm2, %v1795_v49 }
  0xab   : > { %v1265_v51 = vpop.permute.xlu1 %1264  ;;  %v1263_v52 = vpop.permute.xlu0 %1262  ;;  %1919 = vmatprep.mubr.msk.f32.mxu1 %vm2079_vm0, %v2078_v0 }
  0xac   : > { %v1266_v54 = vsel %vm920_vm4, %v1263_v52, %v1265_v51  ;;  %v1814_v51 = vld [vmem:[%s2374_s3] ss:$0 sm:$0xff] }
  0xad   : > { %1913 = vmatpush3.msk.msra.mxu0 %vm254_vm1, %v1266_v54 }
  0xae   : > { %1915 = vmatmul.mubr.msk.f32.vlgmr.msra.gmra.mxu0 %vm250_vm2, %v1799_v53  ;;  %1922 = vmatprep.subr.mxu0 %v2078_v0 }
  0xaf   : > { %v1351_v55 = vpop.permute.xlu1 %1350  ;;  %v1349_v56 = vpop.permute.xlu0 %1348  ;;  %1924 = vmatprep.mubr.msk.f32.mxu0 %vm2079_vm0, %v2078_v0 }
  0xb0   : > { %v1352_v58 = vsel %vm920_vm4, %v1349_v56, %v1351_v55 }
  0xb1   : > { %1918 = vmatpush3.msk.msra.mxu1 %vm254_vm1, %v1352_v58 }
  0xb2   : > { %1920 = vmatmul.mubr.msk.f32.vlgmr.msra.gmra.mxu1 %vm250_vm2, %v1803_v57  ;;  %1927 = vmatprep.subr.mxu1 %v2078_v0 }
  0xb3   : > { %v1437_v59 = vpop.permute.xlu1 %1436  ;;  %v1435_v60 = vpop.permute.xlu0 %1434  ;;  %1929 = vmatprep.mubr.msk.f32.mxu1 %vm2079_vm0, %v2078_v0 }
  0xb4   : > { %v1438_v62 = vsel %vm1093_vm5, %v1435_v60, %v1437_v59 }
  0xb5   : > { %1923 = vmatpush3.msk.msra.mxu0 %vm254_vm1, %v1438_v62 }
  0xb6   : > { %1925 = vmatmul.mubr.msk.f32.vlgmr.msra.gmra.mxu0 %vm250_vm2, %v1807_v61 }
  0xb7   : > { %v1523_v63 = vpop.permute.xlu1 %1522  ;;  %v1521_v1 = vpop.permute.xlu0 %1520 }
  0xb8   : > { %v1524_v3 = vsel %vm1093_vm5, %v1521_v1, %v1523_v63 }
  0xb9   : > { %1928 = vmatpush3.msk.msra.mxu1 %vm254_vm1, %v1524_v3 }
  0xba   : > { %1930 = vmatmul.mubr.msk.f32.vlgmr.msra.gmra.mxu1 %vm250_vm2, %v1811_v2 }
  0xc4   : > { %v1605_v48 = vpop.permute.xlu0 %1604 }
  0xdb   : > { %v400_v0 = vpop.f32.mrf.mxu1 }
  0xdc   : > { %v324_v4 = vpop.f32.mrf.mxu0 }
  0xdd   : > { %v401_v5 = vadd.f32 %v400_v0, %v324_v4  ;;  %v1861_v7 = vpop.f32.mrf.mxu1 }
  0xde   : > { %v1856_v6 = vpop.f32.mrf.mxu0 }
 0x152   : > { %v572_v8 = vpop.f32.mrf.mxu1 }
 0x154   : > { %v1871_v9 = vpop.f32.mrf.mxu1 }
 0x156   : > { %v486_v10 = vpop.f32.mrf.mxu0 }
 0x157   : > { %v490_v11 = vadd.f32 %v486_v10, %v401_v5 }
 0x158   : > { %v1866_v12 = vpop.f32.mrf.mxu0  ;;  %v734_v13 = vpop.f32.mrf.mxu1 }
 0x159   : > { %v576_v14 = vadd.f32 %v572_v8, %v490_v11 }
 0x15a   : > { %v653_v15 = vpop.f32.mrf.mxu0  ;;  %v1881_v16 = vpop.f32.mrf.mxu1 }
 0x15b   : > { %v657_v17 = vadd.f32 %v653_v15, %v576_v14 }
 0x15c   : > { %v1876_v18 = vpop.f32.mrf.mxu0  ;;  %v906_v19 = vpop.f32.mrf.mxu1 }
 0x15d   : > { %v738_v20 = vadd.f32 %v734_v13, %v657_v17 }
 0x15e   : > { %v820_v21 = vpop.f32.mrf.mxu0  ;;  %v1891_v22 = vpop.f32.mrf.mxu1 }
 0x15f   : > { %v824_v23 = vadd.f32 %v820_v21, %v738_v20 }
 0x160   : > { %v1886_v24 = vpop.f32.mrf.mxu0 }
 0x161   : > { %v910_v25 = vadd.f32 %v906_v19, %v824_v23 }
 0x162   : > { %v993_v26 = vpop.f32.mrf.mxu0 }
 0x163   : > { %v997_v27 = vadd.f32 %v993_v26, %v910_v25  ;;  %v1079_v28 = vpop.f32.mrf.mxu1 }
 0x164   : > { %v1896_v29 = vpop.f32.mrf.mxu0 }
 0x165   : > { %v1083_v30 = vadd.f32 %v1079_v28, %v997_v27  ;;  %v1901_v31 = vpop.f32.mrf.mxu1 }
 0x166   : > { %v1166_v32 = vpop.f32.mrf.mxu0 }
 0x167   : > { %v1170_v34 = vadd.f32 %v1166_v32, %v1083_v30 }
 0x168   : > { %v1906_v33 = vpop.f32.mrf.mxu0 }
 0x16a   : > { %v1252_v35 = vpop.f32.mrf.mxu1 }
 0x16b   : > { %v1256_v37 = vadd.f32 %v1252_v35, %v1170_v34 }
 0x16c   : > { %v1911_v36 = vpop.f32.mrf.mxu1 }
 0x16e   : > { %v1338_v38 = vpop.f32.mrf.mxu0 }
 0x16f   : > { %v1342_v40 = vadd.f32 %v1338_v38, %v1256_v37 }
 0x170   : > { %v1916_v39 = vpop.f32.mrf.mxu0 }
 0x172   : > { %v1424_v41 = vpop.f32.mrf.mxu1 }
 0x173   : > { %v1428_v43 = vadd.f32 %v1424_v41, %v1342_v40 }
 0x174   : > { %v1921_v42 = vpop.f32.mrf.mxu1 }
 0x176   : > { %v1510_v44 = vpop.f32.mrf.mxu0 }
 0x177   : > { %v1514_v46 = vadd.f32 %v1510_v44, %v1428_v43 }
 0x178   : > { %v1926_v45 = vpop.f32.mrf.mxu0 }
 0x17a   : > { %v1596_v47 = vpop.f32.mrf.mxu1 }
 0x17b   : > { %v1600_v49 = vadd.f32 %v1596_v47, %v1514_v46 }
 0x17c   : > { %v1931_v50 = vpop.f32.mrf.mxu1 }
 0x17d   : > { %v1607_v52 = vadd.f32 %v1605_v48, %v1600_v49 }
 0x17f   : > { %v1615_v53 = vmul.f32 %v1814_v51, %v1607_v52 }
 0x181   : > { %1616 = vadd.xlane.f32.xlu1 %v1615_v53 }
 0x20a   : > { %v1617_v54 = vpop.xlane.xlu1 %1616 }
 0x20b   : > { %v1618_v55 = vmul.f32 0.015625, %v1617_v54 }
 0x20d   : > { %v1619_v56 = vsub.f32 %v1607_v52, %v1618_v55 }
 0x20f   : > { %v1620_v57 = vmul.f32 %v1619_v56, %v1619_v56 }
 0x211   : > { %v1621_v58 = vmul.f32 %v1814_v51, %v1620_v57 }
 0x213   : > { %1622 = vadd.xlane.f32.xlu0 %v1621_v58 }
 0x29c   : > { %v1623_v59 = vpop.xlane.xlu0 %1622 }
 0x29d   : > { %v1624_v60 = vmul.f32 0.015625, %v1623_v59 }
 0x29f   : > { %v1625_v61 = vadd.f32 1e-05, %v1624_v60 }
 0x2a1   : > { %1998 = vrsqrt.f32 %v1625_v61 }
 0x2ae   : > { %v1999_v62 = vpop.eup %1998 }
 0x2af   : > { %v1627_v63 = vmul.f32 %v1999_v62, %v1619_v56 }
 0x2b1   : > { %vm1628_vm6 = vcmp.ge.f32.partialorder %v1627_v63, 0.0  ;;  %v1629_v1 = vmul.f32 0.2, %v1627_v63 }
 0x2b3   : > { %v1630_v2 = vsel %vm1628_vm6, %v1627_v63, %v1629_v1 }
 0x2b4   : > { %1631 = vst [vmem:[%s230_s26] sm:$0xff] %v1630_v2 }
 0x2b5   : > { %2013 = shalt.err (!%p2010_p5)
}
 0x2b6   : > { %s2014_s11 = scalar_lea.hbm %s2331_s6, 128  ;;  %s2018_s14 = scalar_lea.hbm %s2375_s4, 256 }
 0x2b7   : > { %p2015_p6 = scmp.ne.s32.totalorder %s2331_s6, %s2014_s11  ;;  %p2019_p10 = scmp.lt.s32.totalorder %s2331_s6, %s2375_s4 }
 0x2b8   : > { %p2020_p11 = scmp.lt.s32.totalorder %s2018_s14, %s2014_s11 }
 0x2b9   : > { %p2016_p7 = pnand %p2015_p6, %p2150_p4 }
 0x2ba   : > { %p2021_p12 = por %p2020_p11, %p2019_p10 }
 0x2bb   : > { %p2017_p9 = pneg %p2016_p7 }
 0x2bd   : > { %p2022_p13 = pnand %p2021_p12, %p2017_p9 }
 0x2bf   : > { %2025 = shalt.err (!%p2022_p13)
}
 0x2c0   : > { %1932 = dma.vmem_to_hbm [thread:$0]  (%p2150_p4), %s1648_s29, 128, %s2331_s6, %s1633_s7  }
 0x2c1 PF: > { %p1938_p0 = scmp.ge.s32.totalorder %s2076_s20, 2  ;;  %s1659_s24 = sand.u32 1, %s2056_s15  }
 0x2c2   : > { %s1660_s26 = scalar_lea.sflag [#allocation3], %s1659_s24 }
 0x2c3   : > { %p1935_p1 = pnand %p1938_p0, %p2157_p8 }
 0x2c5   : > { %p1936_p2 = pneg %p1935_p1 }
 0x2c7   : > { %2051 = dma.done.wait (%p1936_p2), %s1660_s26, 128  }
 0x2c8   : > { %2053 = vsyncadd (%p1936_p2), %s1660_s26, 4294967168  ;;  %s17_s20 = sadd.s32 1, %s2076_s20   ;;  %s2378_s15 = smov %s2060_s16 }
 0x2c9   : > { %p14_p3 = scmp.ge.s32.totalorder %s17_s20, 4   ;;  %s2379_s16 = smov %s2064_s17 }
 0x2ca   : > { %s2380_s17 = smov %s2163_s28  ;;  %s2381_s18 = smov %s2072_s19 }
 0x2cb   : > { %s2382_s19 = smov %s2384_s23  ;;  %16 = sbr.rel (!%p14_p3) target bundleno = 4 (0x4), region = 95 }
 0x2d0   :  { %1665 = vsyncpa [#allocation3], 1 }
 0x2d1   :  { %1667 = vsyncpa [#allocation3 + $0x1], 1 }

</bundles_post_ra>
